<compile_context>
chip_gen: v5e
topology: v5e:2x2
jax: 0.10.0
libtpu: 0.0.40
codegen_flags: <defaults>
</compile_context>

<pallas_src>
import functools

import jax
import jax.numpy as jnp
from jax.experimental import pallas as pl
from jax.experimental.pallas import tpu as pltpu


def _channel_attn_kernel(x_ref, w1t_ref, b1_ref, w2t_ref, b2_ref, o_ref,
                         acc_ref, *, inv_hw, hw_t, total_hw, mask_hw):
    # Grid: (batch tiles [parallel], spatial tiles [arbitrary / reduction]).
    s = pl.program_id(1)

    @pl.when(s == 0)
    def _init():
        acc_ref[...] = jnp.zeros_like(acc_ref)

    # Partial sum over the spatial (lane) tile. Accumulate in f32 without
    # materializing an f32 copy of the whole (bt, C, hw_t) block.
    if mask_hw:
        lane = jax.lax.broadcasted_iota(jnp.int32, x_ref.shape, 2)
        valid = (s * hw_t + lane) < total_hw
        xb = jnp.where(valid, x_ref[...], 0)
    else:
        xb = x_ref[...]
    acc_ref[...] += jnp.sum(xb, axis=2, dtype=jnp.float32)

    @pl.when(s == pl.num_programs(1) - 1)
    def _finalize():
        y = acc_ref[...] * inv_hw                                   # (bt, C) mean
        # fc1: (bt, C) @ (C, Cr) + (1, Cr)   (weights pre-transposed in wrapper)
        h = jnp.dot(y, w1t_ref[...], preferred_element_type=jnp.float32) + b1_ref[...]
        h = jnp.maximum(h, 0.0)                                     # ReLU
        # fc2: (bt, Cr) @ (Cr, C) + (1, C)
        a = jnp.dot(h, w2t_ref[...], preferred_element_type=jnp.float32) + b2_ref[...]
        a = jax.nn.sigmoid(a)                                       # (bt, C)
        # Lane-dense store: C stays on lanes straight out of the fc2 matmul.
        o_ref[...] = a[None, :, :].astype(o_ref.dtype)


def channel_attention(x, w1, b1, w2, b2, *, max_block_bytes=3 * 1024 * 1024):
    """x: (B, C, H, W). w1: (Cr, C), b1: (Cr,), w2: (C, Cr), b2: (C,) —
    PyTorch nn.Linear layout. Returns the (B, C, H, W) expanded attention map."""
    B, C, H, W = x.shape
    HW = H * W
    Cr = w1.shape[0]
    itemsize = x.dtype.itemsize
    x2 = x.reshape(B, C, HW)

    # Pre-transpose Linear weights so the in-kernel MLP is MXU-shaped.
    w1t = jnp.asarray(w1).T.astype(jnp.float32)             # (C, Cr)
    w2t = jnp.asarray(w2).T.astype(jnp.float32)             # (Cr, C)
    b1r = jnp.asarray(b1).reshape(1, Cr).astype(jnp.float32)
    b2r = jnp.asarray(b2).reshape(1, C).astype(jnp.float32)

    # ---- Block sizing (VMEM-budget aware, all generations) ------------------
    per_sample = C * HW * itemsize
    if per_sample <= max_block_bytes:
        hw_t = HW                                            # no spatial split
        bt = min(B, max(1, max_block_bytes // per_sample))
        # Keep >=2 batch steps so the "parallel" axis can shard across v7x's
        # two TensorCores and the pipeline has something to overlap.
        if B >= 2 and pl.cdiv(B, bt) < 2:
            bt = pl.cdiv(B, 2)
    else:
        # A single sample exceeds the block budget: tile the spatial axis.
        bt = 1
        hw_t = (max_block_bytes // (C * itemsize)) // 128 * 128
        hw_t = max(128, hw_t)
        hw_t = min(hw_t, HW)
    nb = pl.cdiv(B, bt)
    ns = pl.cdiv(HW, hw_t)
    mask_hw = (HW % hw_t) != 0

    out_dtype = x.dtype
    cost = pl.CostEstimate(
        flops=B * C * HW + 4 * B * C * Cr + 5 * B * C,
        transcendentals=B * C,                               # sigmoid
        bytes_accessed=B * C * HW * itemsize
        + B * C * jnp.dtype(out_dtype).itemsize
        + (2 * C * Cr + C + Cr) * 4,
    )

    kernel = functools.partial(
        _channel_attn_kernel,
        inv_hw=1.0 / HW, hw_t=hw_t, total_hw=HW, mask_hw=mask_hw)

    attn = pl.pallas_call(
        kernel,
        out_shape=jax.ShapeDtypeStruct((nb, bt, C), out_dtype),
        grid_spec=pltpu.PrefetchScalarGridSpec(
            num_scalar_prefetch=0,
            grid=(nb, ns),
            in_specs=[
                pl.BlockSpec((bt, C, hw_t), lambda b, s: (b, 0, s)),  # x tile
                pl.BlockSpec((C, Cr), lambda b, s: (0, 0)),   # fc1 weight^T (resident)
                pl.BlockSpec((1, Cr), lambda b, s: (0, 0)),   # fc1 bias
                pl.BlockSpec((Cr, C), lambda b, s: (0, 0)),   # fc2 weight^T (resident)
                pl.BlockSpec((1, C), lambda b, s: (0, 0)),    # fc2 bias
            ],
            out_specs=pl.BlockSpec((1, bt, C), lambda b, s: (b, 0, 0)),
            scratch_shapes=[pltpu.VMEM((bt, C), jnp.float32)],
        ),
        compiler_params=pltpu.CompilerParams(
            dimension_semantics=("parallel", "arbitrary")),
        cost_estimate=cost,
    )(x2, w1t, b1r, w2t, b2r)

    a = attn.reshape(nb * bt, C)[:B]                         # drop cdiv padding
    # expand_as(x): keep the broadcast out of the kernel — XLA keeps it lazy /
    # fuses it into the consumer, so the kernel never writes B*C*H*W to HBM.
    # TODO(synk): if the surrounding model applies the standard SE multiply
    # (x * attention), fuse that multiply into this kernel (the x block is
    # already VMEM-resident) to avoid re-reading x in the consumer.
    return jnp.broadcast_to(a.reshape(B, C, 1, 1), (B, C, H, W))


def init_params(key, channel, reduction):
    """Deterministic init mimicking nn.Linear's uniform(-1/sqrt(fan_in), ...)."""
    cr = channel // reduction
    k1, k2, k3, k4 = jax.random.split(key, 4)
    lim1 = 1.0 / jnp.sqrt(channel)
    lim2 = 1.0 / jnp.sqrt(cr)
    w1 = jax.random.uniform(k1, (cr, channel), jnp.float32, -lim1, lim1)
    b1 = jax.random.uniform(k2, (cr,), jnp.float32, -lim1, lim1)
    w2 = jax.random.uniform(k3, (channel, cr), jnp.float32, -lim2, lim2)
    b2 = jax.random.uniform(k4, (channel,), jnp.float32, -lim2, lim2)
    return w1, b1, w2, b2


def reference(x, w1, b1, w2, b2):
    y = x.mean(axis=(2, 3))                                  # (B, C)
    h = jnp.maximum(y @ w1.T + b1, 0.0)                      # (B, Cr)
    a = jax.nn.sigmoid(h @ w2.T + b2)                        # (B, C)
    return jnp.broadcast_to(a[:, :, None, None], x.shape)


if __name__ == "__main__":
    # Small, module-consistent shapes: batch=2, channel=64, reduction=16, 8x8 spatial.
    B, C, H, W = 2, 64, 8, 8
    reduction = 16

    key = jax.random.PRNGKey(0)
    kx, kp = jax.random.split(key)
    x = jax.random.normal(kx, (B, C, H, W), jnp.float32)
    w1, b1, w2, b2 = init_params(kp, C, reduction)

    out = channel_attention(x, w1, b1, w2, b2)
    out = jax.block_until_ready(out)

    ref = reference(x, w1, b1, w2, b2)
    assert out.shape == (B, C, H, W)
    assert jnp.allclose(out, ref, atol=1e-5, rtol=1e-5), "mismatch vs JAX reference"

    print("KERNEL_OK")
</pallas_src>

<mosaic_0001>
module attributes {stable_mosaic.version = 11 : i64} {
  func.func @_channel_attn_kernel(%arg0: i32, %arg1: i32, %arg2: memref<1x64x64xf32, #tpu.memory_space<vmem>>, %arg3: memref<64x4xf32, #tpu.memory_space<vmem>>, %arg4: memref<1x4xf32, #tpu.memory_space<vmem>>, %arg5: memref<4x64xf32, #tpu.memory_space<vmem>>, %arg6: memref<1x64xf32, #tpu.memory_space<vmem>>, %arg7: memref<1x1x64xf32, #tpu.memory_space<vmem>>, %arg8: memref<1x64xf32, #tpu.memory_space<vmem>>) attributes {dimension_semantics = [#tpu.dimension_semantics<parallel>, #tpu.dimension_semantics<arbitrary>], iteration_bounds = array<i64: 2, 1>, scalar_prefetch = 0 : i64, scratch_operands = 1 : i64, tpu.core_type = #tpu.core_type<tc>, window_params = [{transform_indices = @transform_0, window_bounds = array<i64: 1, 64, 64>}, {pipeline_mode = #tpu.pipeline_mode<synchronous>, transform_indices = @transform_1, window_bounds = array<i64: 64, 4>}, {pipeline_mode = #tpu.pipeline_mode<synchronous>, transform_indices = @transform_2, window_bounds = array<i64: 1, 4>}, {pipeline_mode = #tpu.pipeline_mode<synchronous>, transform_indices = @transform_3, window_bounds = array<i64: 4, 64>}, {pipeline_mode = #tpu.pipeline_mode<synchronous>, transform_indices = @transform_4, window_bounds = array<i64: 1, 64>}, {transform_indices = @transform_5, window_bounds = array<i64: 1, 1, 64>}]} {
    %c0_i32 = arith.constant 0 : i32
    %0 = arith.cmpi eq, %arg1, %c0_i32 : i32
    %1 = arith.extui %0 : i1 to i32
    %c0_i32_0 = arith.constant 0 : i32
    %2 = arith.cmpi ne, %1, %c0_i32_0 : i32
    scf.if %2 {
      %cst_9 = arith.constant 0.000000e+00 : f32
      %11 = vector.broadcast %cst_9 : f32 to vector<1x64xf32>
      %c0_10 = arith.constant 0 : index
      %c0_11 = arith.constant 0 : index
      %12 = vector.load %arg8[%c0_10, %c0_11] : memref<1x64xf32, #tpu.memory_space<vmem>>, vector<1x64xf32>
      tpu.vector_store %arg8[%c0_10, %c0_11], %11 {strides = array<i32>} : memref<1x64xf32, #tpu.memory_space<vmem>>, vector<1x64xf32>,
    } else {
    }
    %c0 = arith.constant 0 : index
    %c0_1 = arith.constant 0 : index
    %c0_2 = arith.constant 0 : index
    %3 = vector.load %arg2[%c0, %c0_1, %c0_2] : memref<1x64x64xf32, #tpu.memory_space<vmem>>, vector<1x64x64xf32>
    %c0_3 = arith.constant 0 : index
    %c0_4 = arith.constant 0 : index
    %4 = vector.load %arg8[%c0_3, %c0_4] : memref<1x64xf32, #tpu.memory_space<vmem>>, vector<1x64xf32>
    %cst = arith.constant dense<0.000000e+00> : vector<1x64xf32>
    %5 = vector.multi_reduction <add>, %3, %cst [2] : vector<1x64x64xf32> to vector<1x64xf32>
    %6 = arith.addf %4, %5 : vector<1x64xf32>
    %c0_5 = arith.constant 0 : index
    %c0_6 = arith.constant 0 : index
    %7 = vector.load %arg8[%c0_5, %c0_6] : memref<1x64xf32, #tpu.memory_space<vmem>>, vector<1x64xf32>
    tpu.vector_store %arg8[%c0_5, %c0_6], %6 {strides = array<i32>} : memref<1x64xf32, #tpu.memory_space<vmem>>, vector<1x64xf32>,
    %c0_i32_7 = arith.constant 0 : i32
    %8 = arith.cmpi eq, %arg1, %c0_i32_7 : i32
    %9 = arith.extui %8 : i1 to i32
    %c0_i32_8 = arith.constant 0 : i32
    %10 = arith.cmpi ne, %9, %c0_i32_8 : i32
    scf.if %10 {
      %c0_9 = arith.constant 0 : index
      %c0_10 = arith.constant 0 : index
      %11 = vector.load %arg8[%c0_9, %c0_10] : memref<1x64xf32, #tpu.memory_space<vmem>>, vector<1x64xf32>
      %cst_11 = arith.constant 1.562500e-02 : f32
      %12 = vector.broadcast %cst_11 : f32 to vector<1x64xf32>
      %13 = arith.mulf %11, %12 : vector<1x64xf32>
      %c0_12 = arith.constant 0 : index
      %c0_13 = arith.constant 0 : index
      %14 = vector.load %arg3[%c0_12, %c0_13] : memref<64x4xf32, #tpu.memory_space<vmem>>, vector<64x4xf32>
      %cst_14 = arith.constant dense<0.000000e+00> : vector<1x4xf32>
      %15 = tpu.matmul %13, %14, %cst_14 {dimension_numbers = #tpu.dot_dimension_numbers<[1], [0], [0], [1], [0, 0, 1, 1], [], []>} : vector<1x64xf32>, vector<64x4xf32>, vector<1x4xf32> -> vector<1x4xf32>
      %c0_15 = arith.constant 0 : index
      %c0_16 = arith.constant 0 : index
      %16 = vector.load %arg4[%c0_15, %c0_16] : memref<1x4xf32, #tpu.memory_space<vmem>>, vector<1x4xf32>
      %17 = arith.addf %15, %16 : vector<1x4xf32>
      %cst_17 = arith.constant 0.000000e+00 : f32
      %18 = vector.broadcast %cst_17 : f32 to vector<1x4xf32>
      %19 = arith.maximumf %17, %18 : vector<1x4xf32>
      %c0_18 = arith.constant 0 : index
      %c0_19 = arith.constant 0 : index
      %20 = vector.load %arg5[%c0_18, %c0_19] : memref<4x64xf32, #tpu.memory_space<vmem>>, vector<4x64xf32>
      %cst_20 = arith.constant dense<0.000000e+00> : vector<1x64xf32>
      %21 = tpu.matmul %19, %20, %cst_20 {dimension_numbers = #tpu.dot_dimension_numbers<[1], [0], [0], [1], [0, 0, 1, 1], [], []>} : vector<1x4xf32>, vector<4x64xf32>, vector<1x64xf32> -> vector<1x64xf32>
      %c0_21 = arith.constant 0 : index
      %c0_22 = arith.constant 0 : index
      %22 = vector.load %arg6[%c0_21, %c0_22] : memref<1x64xf32, #tpu.memory_space<vmem>>, vector<1x64xf32>
      %23 = arith.addf %21, %22 : vector<1x64xf32>
      %24 = arith.negf %23 : vector<1x64xf32>
      %25 = math.exp %24 : vector<1x64xf32>
      %cst_23 = arith.constant 1.000000e+00 : f32
      %26 = vector.broadcast %cst_23 : f32 to vector<1x64xf32>
      %27 = arith.addf %26, %25 : vector<1x64xf32>
      %28 = arith.divf %26, %27 : vector<1x64xf32>
      %29 = vector.shape_cast %28 : vector<1x64xf32> to vector<1x1x64xf32>
      %c0_24 = arith.constant 0 : index
      %c0_25 = arith.constant 0 : index
      %c0_26 = arith.constant 0 : index
      %30 = vector.load %arg7[%c0_24, %c0_25, %c0_26] : memref<1x1x64xf32, #tpu.memory_space<vmem>>, vector<1x1x64xf32>
      tpu.vector_store %arg7[%c0_24, %c0_25, %c0_26], %29 {strides = array<i32>} : memref<1x1x64xf32, #tpu.memory_space<vmem>>, vector<1x1x64xf32>,
    } else {
    }
    return
  }
  func.func @transform_0(%arg0: i32, %arg1: i32) -> (i32, i32, i32) {
    %c0_i32 = arith.constant 0 : i32
    %c0_i32_0 = arith.constant 0 : i32
    return %arg0, %c0_i32, %arg1 : i32, i32, i32
  }
  func.func @transform_1(%arg0: i32, %arg1: i32) -> (i32, i32) {
    %c0_i32 = arith.constant 0 : i32
    %c0_i32_0 = arith.constant 0 : i32
    %c0_i32_1 = arith.constant 0 : i32
    return %c0_i32, %c0_i32_0 : i32, i32
  }
  func.func @transform_2(%arg0: i32, %arg1: i32) -> (i32, i32) {
    %c0_i32 = arith.constant 0 : i32
    %c0_i32_0 = arith.constant 0 : i32
    %c0_i32_1 = arith.constant 0 : i32
    return %c0_i32, %c0_i32_0 : i32, i32
  }
  func.func @transform_3(%arg0: i32, %arg1: i32) -> (i32, i32) {
    %c0_i32 = arith.constant 0 : i32
    %c0_i32_0 = arith.constant 0 : i32
    %c0_i32_1 = arith.constant 0 : i32
    return %c0_i32, %c0_i32_0 : i32, i32
  }
  func.func @transform_4(%arg0: i32, %arg1: i32) -> (i32, i32) {
    %c0_i32 = arith.constant 0 : i32
    %c0_i32_0 = arith.constant 0 : i32
    %c0_i32_1 = arith.constant 0 : i32
    return %c0_i32, %c0_i32_0 : i32, i32
  }
  func.func @transform_5(%arg0: i32, %arg1: i32) -> (i32, i32, i32) {
    %c0_i32 = arith.constant 0 : i32
    %c0_i32_0 = arith.constant 0 : i32
    %c0_i32_1 = arith.constant 0 : i32
    return %arg0, %c0_i32, %c0_i32_0 : i32, i32, i32
  }
}

</mosaic_0001>

<bundles_post_ra>
// kernel: tpu_custom_call.1
= control target key start
LH: loop header
LB: loop body
LE: loop exit
PB: predicated region body
PF: predicated region fallthrough
CT: control target
= control target key end

     0   :  { %10 = vsyncpa [#allocation4], 0  ;;  %s1089_s0 = inlined_call_operand.hbm [shape: f32[2,64,64], index: 0, kind: input, shape index: {}]   ;;  %s1090_s1 = inlined_call_operand.vmem [shape: f32[64,4], index: 1, kind: input, shape index: {}]   ;;  %s1091_s2 = inlined_call_operand.vmem [shape: f32[1,4], index: 2, kind: input, shape index: {}]   ;;  %s1092_s3 = inlined_call_operand.vmem [shape: f32[4,64], index: 3, kind: input, shape index: {}]   ;;  %s1093_s4 = inlined_call_operand.vmem [shape: f32[1,64], index: 4, kind: input, shape index: {}]   ;;  %s1094_s5 = inlined_call_operand.hbm [shape: f32[2,1,64], index: 5, kind: output, shape index: {}]  }
   0x1   :  { %12 = vsyncpa [#allocation4 + $0x1], 0 }
   0x2   :  { %13 = vsyncpa [#allocation5], 0 }
   0x3   :  { %15 = vsyncpa [#allocation5 + $0x1], 0  ;;  %s923_s18 = smov 0   ;;  %s925_s19 = smov 0  }
   0x4   :  { %s927_s20 = smov 0   ;;  %s929_s21 = smov 0  }
   0x5   :  { %s931_s22 = smov 0   ;;  %s933_s23 = smov 0  }
   0x6 LB: > { %s686_s24 = sadd.s32 4294967295, %s887_s23   ;;  %s687_s25 = sadd.s32 4294967294, %s887_s23   ;;  %s887_s23 = sphi %s933_s23, %s21_s23   ;;  %s883_s22 = sphi %s931_s22, %s1103_s22   ;;  %s879_s21 = sphi %s929_s21, %s1102_s21   ;;  %s875_s20 = sphi %s927_s20, %s1101_s20   ;;  %s871_s19 = sphi %s925_s19, %s1100_s19   ;;  %s867_s18 = sphi %s923_s18, %s1099_s18  }
   0x7   : > { %s33_s26 = sadd.s32 1, %s883_s22  ;;  %s42_s27 = sadd.s32 1, %s875_s20 }
   0x8   : > { %p35_p0 = scmp.ge.s32.totalorder %s33_s26, 2  ;;  %p49_p1 = scmp.ne.s32.totalorder %s875_s20, %s871_s19 }
   0x9   : > { %p50_p2 = scmp.eq.s32.totalorder %s887_s23, 0  ;;  %p55_p3 = scmp.ne.s32.totalorder %s871_s19, %s867_s18 }
   0xa   : > { %s1105_s26 = smov (%p35_p0, %s33_s26), 0  ;;  %p56_p5 = scmp.eq.s32.totalorder %s686_s24, 0 }
   0xb   : > { %p964_p4 = por %p50_p2, %p49_p1  ;;  %s37_s29 = ssub.s32 %s883_s22, %s1105_s26 }
   0xc   : > { %p163_p6 = scmp.eq.s32.totalorder %s686_s24, 1  ;;  %p40_p7 = scmp.eq.s32.totalorder %s37_s29, 0 }
   0xd   : > { %p970_p8 = por %p56_p5, %p55_p3  ;;  %p169_p10 = scmp.eq.s32.totalorder %s687_s25, 1 }
   0xe   : > { %p974_p9 = por %p163_p6, %p49_p1  ;;  %p689_p12 = scmp.ge.s32.totalorder %s887_s23, 2 }
   0xf   : > { %s979_s7 = scalar_select %p40_p7, %s875_s20, %s42_s27  }
  0x10   : > { %p981_p11 = por %p169_p10, %p55_p3  ;;  %p714_p13 = scmp.lt.s32.totalorder %s887_s23, 2 }
  0x11   : > { %s201_s9 = sand.u32 1, %s875_s20   ;;  %s701_s11 = sshll.u32 %s883_s22, 6 }
  0x12   : > { %s690_s10 = sshll.u32 %s201_s9, 6  ;;  %s211_s14 = scalar_lea.hbm %s1089_s0, %s701_s11 }
  0x13   : > { %s205_s15 = scalar_lea.vmem [#allocation3], %s690_s10  ;;  %s212_s17 = sshll.u32 %s211_s14, 4  ;;  %s213_s17 = int_to_ptr.hbm [resolvable:$true] %s212_s17 }
  0x14   : > { %s214_s16 = sshll.u32 %s205_s15, 4  ;;  %p707_p0 = pnand %p714_p13, %p964_p4  ;;  %s215_s16 = int_to_ptr.vmem [resolvable:$true] %s214_s16 }
  0x15   : > { %p693_p1 = scmp.ge.s32.totalorder %s887_s23, 1  ;;  %s202_s24 = scalar_lea.sflag [#allocation4], %s201_s9 }
  0x16   : > { %s889_s25 = smov 128   ;;  %s890_s27 = smov 8  }
  0x17   : > { %709 = dma.hbm_to_vmem [thread:$0]  (!%p707_p0), %s213_s17, 1024, %s215_s16, %s202_s24, %s889_s25, %s889_s25, %s890_s27  }
  0x18   : > { %p222_p2 = scmp.lt.s32.totalorder %s887_s23, 3 }
  0x1a   : > { %p223_p3 = pnand %p693_p1, %p222_p2 }
  0x1b   : > { %s997_s29 = sand.u32 (!%p223_p3), 1, %s871_s19  }
  0x1c   : > { %226 = sbr.rel (%p223_p3) target bundleno = 693 (0x2b5), region = 40  ;;  %s694_s10 = sshll.u32 (!%p223_p3), %s997_s29, 6 }
  0x1d   : > { %s229_s11 = scalar_lea.sflag (!%p223_p3), [#allocation4], %s997_s29  ;;  %s232_s12 = scalar_lea.vmem (!%p223_p3), [#allocation3], %s694_s10 }
  0x21   : > { %858 = dma.done.wait (%p970_p8), %s229_s11, 1024  }
  0x22   : > { %860 = vsyncadd (%p970_p8), %s229_s11, 4294966272  ;;  %vm274_vm0 = vcmask 523264   ;;  %v265_v0 = vld [vmem:[%s232_s12] sm:$0xff]  ;;  %v267_v1 = vld [vmem:[%s232_s12 + $0x10] sm:$0xff]  ;;  %v891_v16 = vmov 0   ;;  %vm263_vm1 = vcmask 516096   ;;  %s606_s27 = scalar_lea.hbm %s1094_s5, %s879_s21 }
  0x23   : > { %v275_v2 = vsel %vm274_vm0, %v265_v0, 0.0  ;;  %v281_v3 = vsel %vm274_vm0, %v267_v1, 0.0  ;;  %v269_v4 = vld [vmem:[%s232_s12 + $0x20] sm:$0xff]  ;;  %v266_v6 = vld [vmem:[%s232_s12 + $0x8] sm:$0xff]  ;;  %v268_v7 = vld [vmem:[%s232_s12 + $0x18] sm:$0xff]  ;;  %768 = vset.pattern.permute.xlu2 %v891_v16  ;;  %769 = vset.pattern.permute.xlu0 %v891_v16  ;;  %vm479_vm2 = vcmask 130112  }
  0x24   : > { %276 = vadd.xlane.f32.xlu0 %v275_v2  ;;  %282 = vadd.xlane.f32.xlu1 %v281_v3  ;;  %v287_v5 = vsel %vm274_vm0, %v269_v4, 0.0  ;;  %v270_v8 = vld [vmem:[%s232_s12 + $0x28] sm:$0xff]  ;;  %v278_v9 = vsel %vm274_vm0, %v266_v6, 0.0  ;;  %v284_v10 = vsel %vm274_vm0, %v268_v7, 0.0  ;;  %v271_v12 = vld [vmem:[%s232_s12 + $0x30] sm:$0xff]  ;;  %v272_v13 = vld [vmem:[%s232_s12 + $0x38] sm:$0xff] }
  0x25   : > { %288 = vadd.xlane.f32.xlu2 %v287_v5  ;;  %v290_v11 = vsel %vm274_vm0, %v270_v8, 0.0  ;;  %v293_v14 = vsel %vm274_vm0, %v271_v12, 0.0  ;;  %v296_v15 = vsel %vm274_vm0, %v272_v13, 0.0  ;;  %770 = vset.pattern.permute.xlu1 %v891_v16  ;;  %vm483_vm3 = vcmask 195712   ;;  %s258_s10 = scalar_lea.vmem [#allocation6], %s997_s29  ;;  %s610_s12 = sshll.u32 %s606_s27, 4  ;;  %s611_s12 = int_to_ptr.hbm [resolvable:$true] %s610_s12 }
  0x26   : > { %vm487_vm4 = vcmask 261312   ;;  %vm491_vm5 = vcmask 326912   ;;  %vm495_vm6 = vcmask 392512   ;;  %vm499_vm7 = vcmask 458112   ;;  %s608_s11 = sshll.u32 %s258_s10, 4  ;;  %s598_s21 = scalar_lea.sflag [#allocation5], %s997_s29  ;;  %s609_s11 = int_to_ptr.vmem [resolvable:$true] %s608_s11 }
  0x27   : > { %vm503_vm8 = vcmask 523712   ;;  %vm553_vm9 = vcmask 1043456   ;;  %vm549_vm10 = vcmask 31744   ;;  %s819_s28 = sshra.s32 %s611_s12, 4  ;;  %s825_s14 = scalar_lea.hbm %s1094_s5, 2  ;;  %s820_s28 = int_to_ptr.hbm [resolvable:$true] %s819_s28 }
  0x28   : > { %s821_s30 = scalar_lea.hbm %s820_s28, 1  ;;  %p826_p7 = scmp.lt.s32.totalorder %s820_s28, %s1094_s5 }
  0x29   : > { %p822_p4 = scmp.ne.s32.totalorder %s820_s28, %s821_s30  ;;  %p827_p8 = scmp.lt.s32.totalorder %s825_s14, %s821_s30 }
  0x2b   : > { %p823_p5 = pnand %p822_p4, %p974_p9  ;;  %p828_p10 = por %p827_p8, %p826_p7 }
  0x2c   : > { %279 = vadd.xlane.f32.xlu0 %v278_v9  ;;  %285 = vadd.xlane.f32.xlu1 %v284_v10 }
  0x2d   : > { %291 = vadd.xlane.f32.xlu2 %v290_v11  ;;  %p824_p6 = pneg %p823_p5 }
  0x2f   : > { %p829_p13 = pnand %p828_p10, %p824_p6 }
  0x34   : > { %294 = vadd.xlane.f32.xlu0 %v293_v14  ;;  %297 = vadd.xlane.f32.xlu1 %v296_v15 }
  0x97   : > { %v277_v17 = vpop.xlane.xlu0 %276  ;;  %v283_v36 = vpop.xlane.xlu1 %282 }
  0x98   : > { %v307_v18 = vperm.slane %v277_v17, 0  ;;  %v308_v19 = vperm.slane %v277_v17, 1  ;;  %v309_v20 = vperm.slane %v277_v17, 2  ;;  %v310_v21 = vperm.slane %v277_v17, 3  ;;  %v289_v56 = vpop.xlane.xlu2 %288 }
  0x99   : > { %v311_v22 = vperm.slane %v277_v17, 4  ;;  %v312_v23 = vperm.slane %v277_v17, 5  ;;  %v313_v24 = vperm.slane %v277_v17, 6  ;;  %v314_v25 = vperm.slane %v277_v17, 7 }
  0x9a   : > { %371 = vst [vmem:[#allocation1] ss:$9 sm:$0xff] %v307_v18  ;;  %v323_v37 = vperm.slane %v283_v36, 0  ;;  %v324_v38 = vperm.slane %v283_v36, 1  ;;  %v325_v39 = vperm.slane %v283_v36, 2  ;;  %v326_v41 = vperm.slane %v283_v36, 3 }
  0x9b   : > { %373 = vst [vmem:[#allocation1 + $0x1] ss:$9 sm:$0xff] %v308_v19  ;;  %v327_v42 = vperm.slane %v283_v36, 4  ;;  %v328_v43 = vperm.slane %v283_v36, 5  ;;  %v329_v44 = vperm.slane %v283_v36, 6  ;;  %v330_v45 = vperm.slane %v283_v36, 7 }
  0x9c   : > { %375 = vst [vmem:[#allocation1 + $0x2] ss:$9 sm:$0xff] %v309_v20  ;;  %v339_v57 = vperm.slane %v289_v56, 0  ;;  %v340_v58 = vperm.slane %v289_v56, 1  ;;  %v341_v59 = vperm.slane %v289_v56, 2  ;;  %v342_v61 = vperm.slane %v289_v56, 3 }
  0x9d   : > { %377 = vst [vmem:[#allocation1 + $0x3] ss:$9 sm:$0xff] %v310_v21  ;;  %v343_v62 = vperm.slane %v289_v56, 4  ;;  %v344_v63 = vperm.slane %v289_v56, 5  ;;  %v345_v0 = vperm.slane %v289_v56, 6  ;;  %v346_v1 = vperm.slane %v289_v56, 7 }
  0x9e   : > { %379 = vst [vmem:[#allocation1 + $0x4] ss:$9 sm:$0xff] %v311_v22 }
  0x9f   : > { %381 = vst [vmem:[#allocation1 + $0x5] ss:$9 sm:$0xff] %v312_v23  ;;  %v280_v26 = vpop.xlane.xlu0 %279  ;;  %v286_v46 = vpop.xlane.xlu1 %285 }
  0xa0   : > { %383 = vst [vmem:[#allocation1 + $0x6] ss:$9 sm:$0xff] %v313_v24  ;;  %v315_v27 = vperm.slane %v280_v26, 0  ;;  %v316_v28 = vperm.slane %v280_v26, 1  ;;  %v317_v29 = vperm.slane %v280_v26, 2  ;;  %v318_v31 = vperm.slane %v280_v26, 3  ;;  %v292_v2 = vpop.xlane.xlu2 %291 }
  0xa1   : > { %385 = vst [vmem:[#allocation1 + $0x7] ss:$9 sm:$0xff] %v314_v25  ;;  %v319_v32 = vperm.slane %v280_v26, 4  ;;  %v320_v33 = vperm.slane %v280_v26, 5  ;;  %v321_v34 = vperm.slane %v280_v26, 6  ;;  %v322_v35 = vperm.slane %v280_v26, 7 }
  0xa2   : > { %v331_v47 = vperm.slane %v286_v46, 0  ;;  %v332_v48 = vperm.slane %v286_v46, 1  ;;  %v333_v49 = vperm.slane %v286_v46, 2  ;;  %v334_v51 = vperm.slane %v286_v46, 3 }
  0xa3   : > { %v335_v52 = vperm.slane %v286_v46, 4  ;;  %v336_v53 = vperm.slane %v286_v46, 5  ;;  %v337_v54 = vperm.slane %v286_v46, 6  ;;  %v338_v55 = vperm.slane %v286_v46, 7 }
  0xa4   : > { %v347_v3 = vperm.slane %v292_v2, 0  ;;  %v348_v4 = vperm.slane %v292_v2, 1  ;;  %v349_v5 = vperm.slane %v292_v2, 2  ;;  %v350_v7 = vperm.slane %v292_v2, 3 }
  0xa5   : > { %v351_v8 = vperm.slane %v292_v2, 4  ;;  %v352_v9 = vperm.slane %v292_v2, 5  ;;  %v353_v10 = vperm.slane %v292_v2, 6  ;;  %v354_v11 = vperm.slane %v292_v2, 7 }
  0xa7   : > { %v295_v12 = vpop.xlane.xlu0 %294  ;;  %v298_v22 = vpop.xlane.xlu1 %297 }
  0xa8   : > { %v386_v30 = vld [vmem:[#allocation1] sm:$0xff]  ;;  %v355_v13 = vperm.slane %v295_v12, 0  ;;  %v356_v14 = vperm.slane %v295_v12, 1  ;;  %v357_v15 = vperm.slane %v295_v12, 2  ;;  %v358_v16 = vperm.slane %v295_v12, 3 }
  0xa9   : > { %387 = vst [vmem:[#allocation1] ss:$9 sm:$0xff] %v315_v27  ;;  %451 = vperm.xlu2 %768, %v386_v30   ;;  %v359_v18 = vperm.slane %v295_v12, 4  ;;  %v360_v19 = vperm.slane %v295_v12, 5  ;;  %v361_v20 = vperm.slane %v295_v12, 6  ;;  %v362_v21 = vperm.slane %v295_v12, 7 }
  0xaa   : > { %388 = vst [vmem:[#allocation1 + $0x1] ss:$9 sm:$0xff] %v316_v28  ;;  %v363_v23 = vperm.slane %v298_v22, 0  ;;  %v364_v24 = vperm.slane %v298_v22, 1  ;;  %v365_v25 = vperm.slane %v298_v22, 2  ;;  %v366_v26 = vperm.slane %v298_v22, 3 }
  0xab   : > { %389 = vst [vmem:[#allocation1 + $0x2] ss:$9 sm:$0xff] %v317_v29  ;;  %v367_v28 = vperm.slane %v298_v22, 4  ;;  %v368_v29 = vperm.slane %v298_v22, 5  ;;  %v369_v30 = vperm.slane %v298_v22, 6 }
  0xac   : > { %390 = vst [vmem:[#allocation1 + $0x3] ss:$9 sm:$0xff] %v318_v31  ;;  %v370_v31 = vperm.slane %v298_v22, 7 }
  0xad   : > { %391 = vst [vmem:[#allocation1 + $0x4] ss:$9 sm:$0xff] %v319_v32 }
  0xae   : > { %392 = vst [vmem:[#allocation1 + $0x5] ss:$9 sm:$0xff] %v320_v33  ;;  %v892_v33 = vmov 0.0  }
  0xaf   : > { %393 = vst [vmem:[#allocation1 + $0x6] ss:$9 sm:$0xff] %v321_v34  ;;  %v521_v34 = vld [vmem:[%s1090_s1 + $0x38] sm:$0xff] }
  0xb0   : > { %394 = vst [vmem:[#allocation1 + $0x7] ss:$9 sm:$0xff] %v322_v35  ;;  %534 = vmatpush.msra.mxu0 %v521_v34  ;;  %v520_v35 = vld [vmem:[%s1090_s1 + $0x30] sm:$0xff] }
  0xb1   : > { %264 = vst.msk [vmem:[#allocation2] sm:$0x1] %vm263_vm1, %v892_v33 }
  0xb2   : > { %535 = vmatpush.msra.mxu0 %v520_v35 }
  0xb7   : > { %v395_v40 = vld [vmem:[#allocation1] sm:$0xff] }
  0xb8   : > { %396 = vst [vmem:[#allocation1] ss:$9 sm:$0xff] %v323_v37  ;;  %454 = vperm.xlu0 %769, %v395_v40   ;;  %v519_v37 = vld [vmem:[%s1090_s1 + $0x28] sm:$0xff]  ;;  %v516_v40 = vld [vmem:[%s1090_s1 + $0x10] sm:$0xff] }
  0xb9   : > { %397 = vst [vmem:[#allocation1 + $0x1] ss:$9 sm:$0xff] %v324_v38  ;;  %536 = vmatpush.msra.mxu0 %v519_v37  ;;  %v518_v38 = vld [vmem:[%s1090_s1 + $0x20] sm:$0xff] }
  0xba   : > { %398 = vst [vmem:[#allocation1 + $0x2] ss:$9 sm:$0xff] %v325_v39  ;;  %v517_v39 = vld [vmem:[%s1090_s1 + $0x18] sm:$0xff] }
  0xbb   : > { %399 = vst [vmem:[#allocation1 + $0x3] ss:$9 sm:$0xff] %v326_v41  ;;  %537 = vmatpush.msra.mxu0 %v518_v38  ;;  %v474_v41 = vlaneseq }
  0xbc   : > { %400 = vst [vmem:[#allocation1 + $0x4] ss:$9 sm:$0xff] %v327_v42  ;;  %v515_v42 = vld [vmem:[%s1090_s1 + $0x8] sm:$0xff] }
  0xbd   : > { %401 = vst [vmem:[#allocation1 + $0x5] ss:$9 sm:$0xff] %v328_v43  ;;  %538 = vmatpush.msra.mxu0 %v517_v39 }
  0xbe   : > { %402 = vst [vmem:[#allocation1 + $0x6] ss:$9 sm:$0xff] %v329_v44  ;;  %v514_v44 = vld [vmem:[%s1090_s1] sm:$0xff] }
  0xbf   : > { %403 = vst [vmem:[#allocation1 + $0x7] ss:$9 sm:$0xff] %v330_v45  ;;  %539 = vmatpush.msra.mxu0 %v516_v40  ;;  %v475_v45 = vand.u32 127, %v474_v41 }
  0xc1   : > { %540 = vmatpush.msra.mxu0 %v515_v42  ;;  %v477_v46 = vadd.s32 4294967288, %v475_v45  ;;  %v493_v56 = vadd.s32 4294967256, %v475_v45  ;;  %v501_v2 = vadd.s32 4294967240, %v475_v45 }
  0xc3   : > { %541 = vmatpush.msra.mxu0 %v514_v44 }
  0xc6   : > { %v404_v50 = vld [vmem:[#allocation1] sm:$0xff] }
  0xc7   : > { %405 = vst [vmem:[#allocation1] ss:$9 sm:$0xff] %v331_v47  ;;  %457 = vperm.xlu1 %770, %v404_v50  }
  0xc8   : > { %406 = vst [vmem:[#allocation1 + $0x1] ss:$9 sm:$0xff] %v332_v48  ;;  %v481_v48 = vadd.s32 4294967280, %v475_v45 }
  0xc9   : > { %407 = vst [vmem:[#allocation1 + $0x2] ss:$9 sm:$0xff] %v333_v49 }
  0xca   : > { %408 = vst [vmem:[#allocation1 + $0x3] ss:$9 sm:$0xff] %v334_v51 }
  0xcb   : > { %409 = vst [vmem:[#allocation1 + $0x4] ss:$9 sm:$0xff] %v335_v52 }
  0xcc   : > { %410 = vst [vmem:[#allocation1 + $0x5] ss:$9 sm:$0xff] %v336_v53  ;;  %v485_v53 = vadd.s32 4294967272, %v475_v45 }
  0xcd   : > { %411 = vst [vmem:[#allocation1 + $0x6] ss:$9 sm:$0xff] %v337_v54 }
  0xce   : > { %412 = vst [vmem:[#allocation1 + $0x7] ss:$9 sm:$0xff] %v338_v55 }
  0xd5   : > { %v413_v60 = vld [vmem:[#allocation1] sm:$0xff] }
  0xd6   : > { %414 = vst [vmem:[#allocation1] ss:$9 sm:$0xff] %v339_v57  ;;  %460 = vperm.xlu2 %768, %v413_v60   ;;  %v489_v57 = vadd.s32 4294967264, %v475_v45 }
  0xd7   : > { %415 = vst [vmem:[#allocation1 + $0x1] ss:$9 sm:$0xff] %v340_v58 }
  0xd8   : > { %416 = vst [vmem:[#allocation1 + $0x2] ss:$9 sm:$0xff] %v341_v59 }
  0xd9   : > { %417 = vst [vmem:[#allocation1 + $0x3] ss:$9 sm:$0xff] %v342_v61 }
  0xda   : > { %418 = vst [vmem:[#allocation1 + $0x4] ss:$9 sm:$0xff] %v343_v62 }
  0xdb   : > { %419 = vst [vmem:[#allocation1 + $0x5] ss:$9 sm:$0xff] %v344_v63 }
  0xdc   : > { %420 = vst [vmem:[#allocation1 + $0x6] ss:$9 sm:$0xff] %v345_v0  ;;  %v497_v0 = vadd.s32 4294967248, %v475_v45 }
  0xdd   : > { %421 = vst [vmem:[#allocation1 + $0x7] ss:$9 sm:$0xff] %v346_v1 }
  0xe4   : > { %v422_v6 = vld [vmem:[#allocation1] sm:$0xff] }
  0xe5   : > { %423 = vst [vmem:[#allocation1] ss:$9 sm:$0xff] %v347_v3  ;;  %463 = vperm.xlu2 %768, %v422_v6  }
  0xe6   : > { %424 = vst [vmem:[#allocation1 + $0x1] ss:$9 sm:$0xff] %v348_v4 }
  0xe7   : > { %425 = vst [vmem:[#allocation1 + $0x2] ss:$9 sm:$0xff] %v349_v5 }
  0xe8   : > { %426 = vst [vmem:[#allocation1 + $0x3] ss:$9 sm:$0xff] %v350_v7  ;;  %v273_v7 = vld [vmem:[#allocation2] sm:$0x1] }
  0xe9   : > { %427 = vst [vmem:[#allocation1 + $0x4] ss:$9 sm:$0xff] %v351_v8 }
  0xea   : > { %428 = vst [vmem:[#allocation1 + $0x5] ss:$9 sm:$0xff] %v352_v9 }
  0xeb   : > { %429 = vst [vmem:[#allocation1 + $0x6] ss:$9 sm:$0xff] %v353_v10 }
  0xec   : > { %430 = vst [vmem:[#allocation1 + $0x7] ss:$9 sm:$0xff] %v354_v11 }
  0xf3   : > { %v431_v17 = vld [vmem:[#allocation1] sm:$0xff] }
  0xf4   : > { %466 = vperm.xlu1 %770, %v431_v17   ;;  %432 = vst [vmem:[#allocation1] ss:$9 sm:$0xff] %v355_v13 }
  0xf5   : > { %433 = vst [vmem:[#allocation1 + $0x1] ss:$9 sm:$0xff] %v356_v14  ;;  %v547_v14 = vld [vmem:[%s1092_s3] sm:$0xf] }
  0xf6   : > { %434 = vst [vmem:[#allocation1 + $0x2] ss:$9 sm:$0xff] %v357_v15  ;;  %696 = vmatpush.msk.msra.mxu1 %vm553_vm9, %v547_v14  ;;  %v522_v15 = vld [vmem:[%s1091_s2] sm:$0x1] }
  0xf7   : > { %435 = vst [vmem:[#allocation1 + $0x3] ss:$9 sm:$0xff] %v358_v16 }
  0xf8   : > { %436 = vst [vmem:[#allocation1 + $0x4] ss:$9 sm:$0xff] %v359_v18 }
  0xf9   : > { %437 = vst [vmem:[#allocation1 + $0x5] ss:$9 sm:$0xff] %v360_v19  ;;  %v548_v19 = vld [vmem:[%s1093_s4] sm:$0x1] }
  0xfa   : > { %438 = vst [vmem:[#allocation1 + $0x6] ss:$9 sm:$0xff] %v361_v20 }
  0xfb   : > { %439 = vst [vmem:[#allocation1 + $0x7] ss:$9 sm:$0xff] %v362_v21 }
 0x102   : > { %v440_v27 = vld [vmem:[#allocation1] sm:$0xff] }
 0x103   : > { %469 = vperm.xlu2 %768, %v440_v27   ;;  %441 = vst [vmem:[#allocation1] ss:$9 sm:$0xff] %v363_v23  ;;  %v452_v36 = vpop.permute.xlu2 %451 }
 0x104   : > { %442 = vst [vmem:[#allocation1 + $0x1] ss:$9 sm:$0xff] %v364_v24  ;;  %v476_v52 = vperm.slane %v452_v36, %v475_v45 }
 0x105   : > { %443 = vst [vmem:[#allocation1 + $0x2] ss:$9 sm:$0xff] %v365_v25 }
 0x106   : > { %444 = vst [vmem:[#allocation1 + $0x3] ss:$9 sm:$0xff] %v366_v26 }
 0x107   : > { %445 = vst [vmem:[#allocation1 + $0x4] ss:$9 sm:$0xff] %v367_v28 }
 0x108   : > { %446 = vst [vmem:[#allocation1 + $0x5] ss:$9 sm:$0xff] %v368_v29 }
 0x109   : > { %447 = vst [vmem:[#allocation1 + $0x6] ss:$9 sm:$0xff] %v369_v30 }
 0x10a   : > { %448 = vst [vmem:[#allocation1 + $0x7] ss:$9 sm:$0xff] %v370_v31 }
 0x111   : > { %v449_v32 = vld [vmem:[#allocation1] sm:$0xff] }
 0x112   : > { %472 = vperm.xlu1 %770, %v449_v32  }
 0x12a   : > { %v455_v47 = vpop.permute.xlu0 %454 }
 0x12b   : > { %v478_v50 = vperm.slane %v455_v47, %v477_v46 }
 0x12d   : > { %v480_v55 = vsel %vm479_vm2, %v478_v50, %v476_v52 }
 0x130   : > { %v461_v43 = vpop.permute.xlu2 %460 }
 0x131   : > { %v486_v60 = vperm.slane %v461_v43, %v485_v53 }
 0x139   : > { %v458_v49 = vpop.permute.xlu1 %457 }
 0x13a   : > { %v482_v51 = vperm.slane %v458_v49, %v481_v48 }
 0x13c   : > { %v484_v58 = vsel %vm483_vm3, %v482_v51, %v480_v55 }
 0x13d   : > { %v488_v61 = vsel %vm487_vm4, %v486_v60, %v484_v58 }
 0x13f   : > { %v464_v54 = vpop.permute.xlu2 %463 }
 0x140   : > { %v490_v63 = vperm.slane %v464_v54, %v489_v57 }
 0x142   : > { %v492_v3 = vsel %vm491_vm5, %v490_v63, %v488_v61 }
 0x15d   : > { %v470_v1 = vpop.permute.xlu2 %469 }
 0x15e   : > { %v498_v5 = vperm.slane %v470_v1, %v497_v0 }
 0x166   : > { %v467_v59 = vpop.permute.xlu1 %466 }
 0x167   : > { %v494_v62 = vperm.slane %v467_v59, %v493_v56 }
 0x169   : > { %v496_v4 = vsel %vm495_vm6, %v494_v62, %v492_v3 }
 0x16a   : > { %v500_v9 = vsel %vm499_vm7, %v498_v5, %v496_v4 }
 0x184   : > { %v473_v6 = vpop.permute.xlu1 %472 }
 0x185   : > { %v502_v8 = vperm.slane %v473_v6, %v501_v2 }
 0x187   : > { %v504_v10 = vsel %vm503_vm8, %v502_v8, %v500_v9 }
 0x188   : > { %v506_v11 = vadd.f32 %v504_v10, %v273_v7 }
 0x18a   : > { %508 = vst.msk [vmem:[#allocation2] sm:$0x1] %vm263_vm1, %v506_v11 }
 0x191   : > { %v512_v12 = vld [vmem:[#allocation2] sm:$0x1] }
 0x192   : > { %v513_v13 = vmul.f32 0.015625, %v512_v12 }
 0x194   : > { %695 = vmatmul.msk.f32.vlgmr.msra.gmra.mxu0 %vm274_vm0, %v513_v13 }
 0x211   : > { %v543_v16 = vpop.f32.mrf.mxu0 }
 0x212   : > { %v544_v17 = vadd.f32 %v543_v16, %v522_v15 }
 0x214   : > { %v546_v18 = vmax.f32 %v544_v17, 0.0 }
 0x216   : > { %697 = vmatmul.msk.f32.vlgmr.msra.gmra.mxu1 %vm549_vm10, %v546_v18 }
 0x293   : > { %v574_v20 = vpop.f32.mrf.mxu1 }
 0x294   : > { %v575_v21 = vadd.f32 %v574_v20, %v548_v19 }
 0x296   : > { %v698_v22 = vmul.f32 -1.442695, %v575_v21 }
 0x298   : > { %771 = vpow2.f32 %v698_v22 }
 0x29e   : > { %v772_v23 = vpop.eup %771 }
 0x29f   : > { %v580_v24 = vadd.f32 1.0, %v772_v23 }
 0x2a1   : > { %773 = vrcp.f32 %v580_v24  ;;  %v592_v28 = vand.u32 2147483648, %v580_v24  ;;  %v590_v30 = vand.u32 2147483647, %v580_v24  ;;  %vm586_vm12 = vweird.f32 %v580_v24 }
 0x2a3   : > { %v593_v32 = vor.u32 1.1754944e-38, %v592_v28  ;;  %vm591_vm14 = vcmp.eq.f32.partialorder %v590_v30, 8.507059e+37 }
 0x2a7   : > { %v774_v25 = vpop.eup %773 }
 0x2a8   : > { %v582_v26 = vmul.f32 %v774_v25, %v580_v24  ;;  %vm587_vm11 = vweird.f32 %v774_v25 }
 0x2a9   : > { %vm588_vm13 = vmor %vm586_vm12, %vm587_vm11 }
 0x2aa   : > { %v583_v27 = vsub.f32 1.0, %v582_v26 }
 0x2ac   : > { %v584_v29 = vmul.f32 %v774_v25, %v583_v27 }
 0x2ae   : > { %v585_v31 = vadd.f32 %v774_v25, %v584_v29 }
 0x2b0   : > { %v589_v33 = vsel %vm588_vm13, %v774_v25, %v585_v31 }
 0x2b1   : > { %v594_v34 = vsel %vm591_vm14, %v593_v32, %v589_v33 }
 0x2b2   : > { %596 = vst.msk [vmem:[%s258_s10] sm:$0x1] %vm263_vm1, %v594_v34 }
 0x2b3   : > { %832 = shalt.err (!%p829_p13)
}
 0x2b4   : > { %704 = dma.vmem_to_hbm [thread:$0]  (%p974_p9), %s609_s11, 16, %s611_s12, %s598_s21  }
 0x2b5 PF: > { %s622_s29 = sand.u32 1, %s867_s18   ;;  %p711_p0 = pnand %p689_p12, %p981_p11 }
 0x2b6   : > { %s623_s17 = scalar_lea.sflag [#allocation5], %s622_s29 }
 0x2b7   : > { %p712_p1 = pneg %p711_p0 }
 0x2b9   : > { %862 = dma.done.wait (%p712_p1), %s623_s17, 16  }
 0x2ba   : > { %864 = vsyncadd (%p712_p1), %s623_s17, 4294967280  ;;  %s21_s23 = sadd.s32 1, %s887_s23   ;;  %s1099_s18 = smov %s871_s19 }
 0x2bb   : > { %p18_p2 = scmp.ge.s32.totalorder %s21_s23, 4   ;;  %s1100_s19 = smov %s875_s20 }
 0x2bc   : > { %s1101_s20 = smov %s979_s7  ;;  %s1102_s21 = smov %s883_s22 }
 0x2bd   : > { %s1103_s22 = smov %s1105_s26  ;;  %20 = sbr.rel (!%p18_p2) target bundleno = 6 (0x6), region = 100 }
 0x2c2   :  { %628 = vsyncpa [#allocation4], 1 }
 0x2c3   :  { %630 = vsyncpa [#allocation4 + $0x1], 1 }
 0x2c4   :  { %631 = vsyncpa [#allocation5], 1 }
 0x2c5   :  { %633 = vsyncpa [#allocation5 + $0x1], 1 }

</bundles_post_ra>
